<compile_context>
chip_gen: v5e
topology: v5e:2x2
jax: 0.10.0
libtpu: 0.0.40
codegen_flags: <defaults>
</compile_context>

<pallas_src>
import jax
import jax.numpy as jnp
from jax.experimental import pallas as pl
from jax.experimental.pallas import tpu as pltpu


_LCHUNK = 8  # one sublane tile along the length axis


def _ceil_to(n, m):
    return -(-n // m) * m


def _word_seq_attn_kernel(x_ref, seq_ref, len_ref, out_ref):
    TB, L, D = seq_ref.shape

    # (TB, D) -> (TB, 1, D) once per grid step (cheap vs. streaming a padded
    # rank-3 x tile from HBM); lengths -> (TB, 1, 1) for broadcast compares.
    x3 = x_ref[...].astype(jnp.float32).reshape(TB, 1, D)
    len3 = len_ref[...].reshape(TB, 1, 1)

    def chunk_update(l0, c, denom, acc):
        # Sublane-aligned slab of seq rows l0 .. l0+c-1: (TB, c, D).
        chunk = seq_ref[:, pl.ds(l0, c), :].astype(jnp.float32)
        # score: VPU mul + XLU lane-reduce -> (TB, c, 1) with c on sublanes.
        dots = jnp.sum(x3 * chunk, axis=-1, keepdims=True)
        pos = l0 + jax.lax.broadcasted_iota(jnp.int32, (TB, c, 1), 1)
        # Mask before exp: equals mask*exp(score) for finite scores, no inf*0.
        e = jnp.where(pos < len3, jnp.exp(dots), jnp.float32(0.0))   # (TB, c, 1)
        denom = denom + jnp.sum(e, axis=1, keepdims=True)            # (TB, 1, 1)
        # Unnormalized weighted sum; lane-broadcast of e over D, sublane reduce.
        acc = acc + jnp.sum(e * chunk, axis=1)                       # (TB, D)
        return denom, acc

    denom = jnp.zeros((TB, 1, 1), jnp.float32)
    acc = jnp.zeros((TB, D), jnp.float32)

    n_full = L // _LCHUNK
    if 0 < n_full <= 4:
        # Short: fully static unroll (static slice starts).
        for i in range(n_full):
            denom, acc = chunk_update(i * _LCHUNK, _LCHUNK, denom, acc)
    elif n_full > 4:
        def body(i, carry):
            l0 = pl.multiple_of(i * _LCHUNK, _LCHUNK)
            return chunk_update(l0, _LCHUNK, *carry)
        denom, acc = jax.lax.fori_loop(0, n_full, body, (denom, acc), unroll=2)

    rem = L - n_full * _LCHUNK
    if rem > 0:
        denom, acc = chunk_update(n_full * _LCHUNK, rem, denom, acc)

    # out = acc / (sum_exp * L)  == mean_l(weight * seq).  Exact divide (the
    # denominator is one scalar per row; approx reciprocal saves nothing).
    # lengths == 0 rows are guarded to 0 instead of NaN.
    inv = 1.0 / (jnp.maximum(denom[:, :, 0], jnp.float32(1e-30)) * jnp.float32(L))
    out_ref[...] = (acc * inv).astype(out_ref.dtype)


def _tile_vmem_bytes(bb, L, D, seq_itemsize, x_itemsize):
    """VMEM footprint of one grid step: every double-buffered stream at its
    padded (8,128) tile size plus the in-kernel f32 chunk temporaries."""
    Dp = _ceil_to(D, 128)
    Lp = _ceil_to(L, 8)
    bbp = _ceil_to(bb, 8)
    seq_tile = bb * Lp * Dp * seq_itemsize
    x_tile = bbp * Dp * x_itemsize
    out_tile = bbp * Dp * x_itemsize
    len_tile = bbp * 128 * 4
    chunk = min(_LCHUNK, L)
    temps = 2 * bb * chunk * Dp * 4 + 2 * bb * Dp * 4   # chunk products + f32 acc
    return 2 * (seq_tile + x_tile + out_tile + len_tile) + temps


def _pick_block_b(B, L, D, seq_itemsize, x_itemsize, budget_bytes, min_steps=8):
    """Largest multiple-of-8 batch tile that fits the full VMEM budget and
    keeps >= min_steps grid steps (pipeline depth / multi-TensorCore sharding)."""
    max_bb = _ceil_to(B, 8)
    desired_steps = max(1, min(min_steps, max_bb // 8))
    best = 8
    for bb in range(8, max_bb + 1, 8):
        if _tile_vmem_bytes(bb, L, D, seq_itemsize, x_itemsize) > budget_bytes:
            break
        if -(-B // bb) < desired_steps:
            break
        best = bb
    return best


def _device_vmem_plan():
    """(vmem_limit_bytes or None, total per-step VMEM budget) per TPU generation."""
    try:
        kind = jax.devices()[0].device_kind.lower()
    except Exception:
        kind = ""
    if "v7" in kind:
        # v7x: only 64 MiB physical VMEM per TensorCore -> cap well below it.
        return 52 << 20, 34 << 20
    if "v6" in kind:
        # v6e: 128 MiB physical; raise the 32 MiB scoped default.
        return 96 << 20, 60 << 20
    if "v5e" in kind or "v5 lite" in kind or "v5lite" in kind:
        # v5e: tight 16 MiB scoped default; modest raise, conservative budget.
        return 48 << 20, 28 << 20
    if "v5" in kind or "v4" in kind:
        return 64 << 20, 40 << 20
    # Unknown part: stay under the most conservative scoped-VMEM default.
    return None, 10 << 20


def word_seq_attention_forward(x, seq, lengths, *, block_b=None, interpret=False):
    """x: (B, D), seq: (B, L, D), lengths: (B,) int -> (B, D) in x.dtype."""
    B, D = x.shape
    Bs, L, Ds = seq.shape
    assert B == Bs and D == Ds, "dot-product score requires input_size == seq_size"

    vmem_limit, budget = _device_vmem_plan()
    if block_b is None:
        block_b = _pick_block_b(B, L, D, seq.dtype.itemsize, x.dtype.itemsize, budget)
    block_b = max(8, _ceil_to(int(block_b), 8))

    # Pad the batch instead of requiring a divisor; padded rows (lengths = 0)
    # are guarded inside the kernel and sliced off below.
    B_pad = _ceil_to(B, block_b)
    if B_pad != B:
        pad = B_pad - B
        x = jnp.pad(x, ((0, pad), (0, 0)))
        seq = jnp.pad(seq, ((0, pad), (0, 0), (0, 0)))
        lengths = jnp.pad(lengths, ((0, pad),))

    len2 = lengths.astype(jnp.int32).reshape(B_pad, 1)

    cp_kwargs = dict(dimension_semantics=("parallel",))
    if vmem_limit is not None:
        cp_kwargs["vmem_limit_bytes"] = int(vmem_limit)

    out = pl.pallas_call(
        _word_seq_attn_kernel,
        out_shape=jax.ShapeDtypeStruct((B_pad, D), x.dtype),
        grid=(B_pad // block_b,),
        in_specs=[
            pl.BlockSpec((block_b, D), lambda i: (i, 0)),
            pl.BlockSpec((block_b, L, D), lambda i: (i, 0, 0)),
            pl.BlockSpec((block_b, 1), lambda i: (i, 0)),
        ],
        out_specs=pl.BlockSpec((block_b, D), lambda i: (i, 0)),
        compiler_params=pltpu.CompilerParams(**cp_kwargs),
        interpret=interpret,
    )(x, seq, len2)
    return out[:B]


def _reference_forward(x, seq, lengths):
    """Pure-JAX mirror of the PyTorch forward (true-f32 dot score, mask*exp)."""
    B, L, D = seq.shape
    score = jnp.sum(x[:, None, :] * seq, axis=-1)
    exp_score = jnp.exp(score)
    mask = (jnp.arange(L)[None, :] < lengths[:, None]).astype(exp_score.dtype)
    exp_score = mask * exp_score
    weight = exp_score / jnp.sum(exp_score, axis=1, keepdims=True)
    return jnp.mean(weight[:, :, None] * seq, axis=1)


if __name__ == "__main__":
    key = jax.random.PRNGKey(0)
    k_x, k_seq = jax.random.split(key)

    # D = 128 keeps loads/stores lane-dense; auto tiler picks block_b = 8 so
    # the grid has 2 steps and the double-buffered pipeline is exercised.
    B, L, D = 16, 8, 128
    x = jax.random.normal(k_x, (B, D), dtype=jnp.float32) / jnp.sqrt(jnp.float32(D))
    seq = jax.random.normal(k_seq, (B, L, D), dtype=jnp.float32)
    lengths = jnp.array([5, 8, 3, 1, 8, 2, 7, 6, 4, 8, 1, 5, 3, 8, 2, 6],
                        dtype=jnp.int32)

    out = word_seq_attention_forward(x, seq, lengths)
    out = jax.block_until_ready(out)

    ref = _reference_forward(x, seq, lengths)
    assert out.shape == (B, D)
    # Tight tolerance: true-f32 VPU math + exact reciprocal (no approx EUP,
    # no bf16 MXU truncation).
    assert jnp.allclose(out, ref, atol=1e-5, rtol=1e-4), "mismatch vs reference"

    print("KERNEL_OK")
</pallas_src>

<mosaic_0001>
module attributes {stable_mosaic.version = 11 : i64} {
  func.func @_word_seq_attn_kernel(%arg0: i32, %arg1: memref<8x128xf32, #tpu.memory_space<vmem>>, %arg2: memref<8x8x128xf32, #tpu.memory_space<vmem>>, %arg3: memref<8x1xi32, #tpu.memory_space<vmem>>, %arg4: memref<8x128xf32, #tpu.memory_space<vmem>>) attributes {dimension_semantics = [#tpu.dimension_semantics<parallel>], iteration_bounds = array<i64: 2>, scalar_prefetch = 0 : i64, scratch_operands = 0 : i64, tpu.core_type = #tpu.core_type<tc>, window_params = [{transform_indices = @transform_0, window_bounds = array<i64: 8, 128>}, {transform_indices = @transform_1, window_bounds = array<i64: 8, 8, 128>}, {transform_indices = @transform_2, window_bounds = array<i64: 8, 1>}, {transform_indices = @transform_3, window_bounds = array<i64: 8, 128>}]} {
    %c0 = arith.constant 0 : index
    %c0_0 = arith.constant 0 : index
    %0 = vector.load %arg1[%c0, %c0_0] : memref<8x128xf32, #tpu.memory_space<vmem>>, vector<8x128xf32>
    %1 = vector.shape_cast %0 : vector<8x128xf32> to vector<8x1x128xf32>
    %c0_1 = arith.constant 0 : index
    %c0_2 = arith.constant 0 : index
    %2 = vector.load %arg3[%c0_1, %c0_2] : memref<8x1xi32, #tpu.memory_space<vmem>>, vector<8x1xi32>
    %3 = vector.shape_cast %2 : vector<8x1xi32> to vector<8x1x1xi32>
    %cst = arith.constant 0.000000e+00 : f32
    %4 = vector.broadcast %cst : f32 to vector<8x1x1xf32>
    %cst_3 = arith.constant 0.000000e+00 : f32
    %5 = vector.broadcast %cst_3 : f32 to vector<8x128xf32>
    %c0_4 = arith.constant 0 : index
    %c0_5 = arith.constant 0 : index
    %c0_6 = arith.constant 0 : index
    %6 = vector.load %arg2[%c0_4, %c0_5, %c0_6] : memref<8x8x128xf32, #tpu.memory_space<vmem>>, vector<8x8x128xf32>
    %7 = vector.broadcast %1 : vector<8x1x128xf32> to vector<8x8x128xf32>
    %8 = arith.mulf %7, %6 : vector<8x8x128xf32>
    %cst_7 = arith.constant dense<0.000000e+00> : vector<8x8xf32>
    %9 = vector.multi_reduction <add>, %8, %cst_7 [2] : vector<8x8x128xf32> to vector<8x8xf32>
    %10 = vector.shape_cast %9 : vector<8x8xf32> to vector<8x8x1xf32>
    %11 = tpu.iota {dimensions = array<i32: 1>} : vector<8x8x1xi32>
    %c0_i32 = arith.constant 0 : i32
    %12 = vector.broadcast %c0_i32 : i32 to vector<8x8x1xi32>
    %13 = arith.addi %12, %11 : vector<8x8x1xi32>
    %14 = vector.broadcast %3 : vector<8x1x1xi32> to vector<8x8x1xi32>
    %15 = arith.cmpi slt, %13, %14 : vector<8x8x1xi32>
    %16 = math.exp %10 : vector<8x8x1xf32>
    %cst_8 = arith.constant 0.000000e+00 : f32
    %17 = vector.broadcast %cst_8 : f32 to vector<8x8x1xf32>
    %18 = arith.select %15, %16, %17 : vector<8x8x1xi1>, vector<8x8x1xf32>
    %cst_9 = arith.constant dense<0.000000e+00> : vector<8x1xf32>
    %19 = vector.multi_reduction <add>, %18, %cst_9 [1] : vector<8x8x1xf32> to vector<8x1xf32>
    %20 = vector.shape_cast %19 : vector<8x1xf32> to vector<8x1x1xf32>
    %21 = arith.addf %4, %20 : vector<8x1x1xf32>
    %22 = vector.broadcast %18 : vector<8x8x1xf32> to vector<8x8x128xf32>
    %23 = arith.mulf %22, %6 : vector<8x8x128xf32>
    %cst_10 = arith.constant dense<0.000000e+00> : vector<8x128xf32>
    %24 = vector.multi_reduction <add>, %23, %cst_10 [1] : vector<8x8x128xf32> to vector<8x128xf32>
    %25 = arith.addf %5, %24 : vector<8x128xf32>
    %26 = vector.shape_cast %21 : vector<8x1x1xf32> to vector<8x1xf32>
    %cst_11 = arith.constant 1.000000e-30 : f32
    %27 = vector.broadcast %cst_11 : f32 to vector<8x1xf32>
    %28 = arith.maximumf %26, %27 : vector<8x1xf32>
    %cst_12 = arith.constant 8.000000e+00 : f32
    %29 = vector.broadcast %cst_12 : f32 to vector<8x1xf32>
    %30 = arith.mulf %28, %29 : vector<8x1xf32>
    %cst_13 = arith.constant 1.000000e+00 : f32
    %31 = vector.broadcast %cst_13 : f32 to vector<8x1xf32>
    %32 = arith.divf %31, %30 : vector<8x1xf32>
    %33 = vector.broadcast %32 : vector<8x1xf32> to vector<8x128xf32>
    %34 = arith.mulf %25, %33 : vector<8x128xf32>
    %c0_14 = arith.constant 0 : index
    %c0_15 = arith.constant 0 : index
    %35 = vector.load %arg4[%c0_14, %c0_15] : memref<8x128xf32, #tpu.memory_space<vmem>>, vector<8x128xf32>
    tpu.vector_store %arg4[%c0_14, %c0_15], %34 {strides = array<i32>} : memref<8x128xf32, #tpu.memory_space<vmem>>, vector<8x128xf32>,
    return
  }
  func.func @transform_0(%arg0: i32) -> (i32, i32) {
    %c0_i32 = arith.constant 0 : i32
    %c0_i32_0 = arith.constant 0 : i32
    return %arg0, %c0_i32 : i32, i32
  }
  func.func @transform_1(%arg0: i32) -> (i32, i32, i32) {
    %c0_i32 = arith.constant 0 : i32
    %c0_i32_0 = arith.constant 0 : i32
    %c0_i32_1 = arith.constant 0 : i32
    return %arg0, %c0_i32, %c0_i32_0 : i32, i32, i32
  }
  func.func @transform_2(%arg0: i32) -> (i32, i32) {
    %c0_i32 = arith.constant 0 : i32
    %c0_i32_0 = arith.constant 0 : i32
    return %arg0, %c0_i32 : i32, i32
  }
  func.func @transform_3(%arg0: i32) -> (i32, i32) {
    %c0_i32 = arith.constant 0 : i32
    %c0_i32_0 = arith.constant 0 : i32
    return %arg0, %c0_i32 : i32, i32
  }
}

</mosaic_0001>

<bundles_post_ra>
// kernel: tpu_custom_call.1
= control target key start
LH: loop header
LB: loop body
LE: loop exit
PB: predicated region body
PF: predicated region fallthrough
CT: control target
= control target key end

     0   :  { %8 = vsyncpa [#allocation3], 0  ;;  %s1364_s0 = inlined_call_operand.vmem [shape: f32[16,128], index: 0, kind: input, shape index: {}]   ;;  %s1365_s1 = inlined_call_operand.hbm [shape: f32[16,8,128], index: 1, kind: input, shape index: {}]   ;;  %s1366_s2 = inlined_call_operand.vmem [shape: s32[16,1], index: 2, kind: input, shape index: {}]   ;;  %s1367_s3 = inlined_call_operand.hbm [shape: f32[16,128], index: 3, kind: output, shape index: {}]  }
   0x1   :  { %10 = vsyncpa [#allocation3 + $0x1], 0 }
   0x2   :  { %11 = vsyncpa [#allocation4], 0 }
   0x3   :  { %13 = vsyncpa [#allocation4 + $0x1], 0  ;;  %s1041_s12 = smov 0   ;;  %s1043_s13 = smov 0  }
   0x4   :  { %s1045_s14 = smov 0   ;;  %s1047_s15 = smov 0  }
   0x5 LB: > { %s1062_s16 = sadd.s32 4294967295, %s1016_s15   ;;  %s820_s17 = sadd.s32 4294967294, %s1016_s15   ;;  %s1016_s15 = sphi %s1047_s15, %s1385_s15   ;;  %s1012_s14 = sphi %s1045_s14, %s1384_s14   ;;  %s1008_s13 = sphi %s1043_s13, %s1383_s13   ;;  %s1004_s12 = sphi %s1041_s12, %s1382_s12  }
   0x6   : > { %s1066_s18 = sadd.s32 1, %s1016_s15   ;;  %s52_s19 = sadd.s32 1, %s1012_s14 }
   0x7   : > { %s49_s20 = ssub.s32 %s1016_s15, %s1066_s18  ;;  %p59_p0 = scmp.ne.s32.totalorder %s1012_s14, %s1008_s13 }
   0x8   : > { %p50_p1 = scmp.eq.s32.totalorder %s49_s20, 0  ;;  %p60_p2 = scmp.eq.s32.totalorder %s1016_s15, 0 }
   0x9   : > { %p65_p3 = scmp.ne.s32.totalorder %s1008_s13, %s1004_s12  ;;  %p66_p4 = scmp.eq.s32.totalorder %s1062_s16, 0 }
   0xa   : > { %s1078_s21 = scalar_select %p50_p1, %s1012_s14, %s52_s19  }
   0xb   : > { %p1080_p5 = por %p60_p2, %p59_p0  ;;  %p1084_p6 = por %p66_p4, %p65_p3 }
   0xc   : > { %p115_p7 = scmp.eq.s32.totalorder %s1062_s16, 1  ;;  %p121_p8 = scmp.eq.s32.totalorder %s820_s17, 1 }
   0xd   : > { %p848_p10 = scmp.lt.s32.totalorder %s1016_s15, 2  ;;  %s148_s26 = sand.u32 1, %s1012_s14  }
   0xe   : > { %p1091_p11 = por %p115_p7, %p59_p0  ;;  %p1095_p12 = por %p121_p8, %p65_p3 }
   0xf   : > { %s835_s27 = sshll.u32 %s1016_s15, 6  ;;  %s823_s28 = sshll.u32 %s148_s26, 6 }
  0x10   : > { %s157_s4 = scalar_lea.hbm %s1365_s1, %s835_s27  ;;  %s152_s6 = scalar_lea.vmem [#allocation2], %s823_s28 }
  0x11   : > { %s158_s5 = sshll.u32 %s157_s4, 4  ;;  %s160_s7 = sshll.u32 %s152_s6, 4  ;;  %s159_s5 = int_to_ptr.hbm [resolvable:$true] %s158_s5  ;;  %s161_s7 = int_to_ptr.vmem [resolvable:$true] %s160_s7 }
  0x12   : > { %p1106_p13 = pnand %p848_p10, %p1080_p5  ;;  %p826_p0 = scmp.ge.s32.totalorder %s1016_s15, 1 }
  0x13   : > { %p175_p1 = scmp.lt.s32.totalorder %s1016_s15, 3  ;;  %s149_s9 = scalar_lea.sflag [#allocation3], %s148_s26 }
  0x14   : > { %s920_s10 = sshra.s32 %s159_s5, 4  ;;  %p924_p3 = pneg %p1106_p13  ;;  %s921_s10 = int_to_ptr.hbm [resolvable:$true] %s920_s10 }
  0x15   : > { %s922_s11 = scalar_lea.hbm %s921_s10, 64  ;;  %s927_s20 = scalar_lea.hbm %s1365_s1, 128 }
  0x16   : > { %p923_p2 = scmp.ne.s32.totalorder %s921_s10, %s922_s11  ;;  %p928_p5 = scmp.lt.s32.totalorder %s921_s10, %s1365_s1 }
  0x17   : > { %p929_p8 = scmp.lt.s32.totalorder %s927_s20, %s922_s11 }
  0x18   : > { %p925_p4 = pnand %p924_p3, %p923_p2 }
  0x19   : > { %p930_p10 = por %p929_p8, %p928_p5 }
  0x1a   : > { %p926_p7 = pneg %p925_p4 }
  0x1c   : > { %p931_p9 = pnand %p930_p10, %p926_p7 }
  0x1e   : > { %934 = shalt.err (!%p931_p9)
}
  0x1f   : > { %s1018_s26 = smov 128   ;;  %s1019_s28 = smov 8  }
  0x20   : > { %843 = dma.hbm_to_vmem [thread:$0]  (!%p1106_p13), %s159_s5, 1024, %s161_s7, %s149_s9, %s1018_s26, %s1018_s26, %s1019_s28  }
  0x21   : > { %p176_p2 = pnand %p826_p0, %p175_p1 }
  0x22   : > { %s1127_s29 = sand.u32 (!%p176_p2), 1, %s1008_s13  }
  0x23   : > { %179 = sbr.rel (%p176_p2) target bundleno = 354 (0x162), region = 32  ;;  %s827_s30 = sshll.u32 (!%p176_p2), %s1127_s29, 6 }
  0x24   : > { %s182_s4 = scalar_lea.sflag (!%p176_p2), [#allocation3], %s1127_s29  ;;  %s1131_s6 = scalar_lea.vmem (!%p176_p2), [#allocation2], %s827_s30 }
  0x28   : > { %995 = dma.done.wait (%p1084_p6), %s182_s4, 1024  }
  0x29   : > { %997 = vsyncadd (%p1084_p6), %s182_s4, 4294966272  ;;  %p217_p9 = scmp.lt.s32.totalorder %s1062_s16, 1  ;;  %v1148_v1 = vld [vmem:[%s1131_s6] sm:$0xff]  ;;  %v1154_v7 = vld [vmem:[%s1131_s6 + $0x10] sm:$0xff]  ;;  %v1020_v32 = vmov 0   ;;  %v291_v34 = vlaneseq  ;;  %vm333_vm1 = vcmask 7168  }
  0x2a   : > { %v1151_v6 = vld [vmem:[%s1131_s6 + $0x20] sm:$0xff]  ;;  %v1160_v16 = vld [vmem:[%s1131_s6 + $0x8] sm:$0xff]  ;;  %v1166_v20 = vld [vmem:[%s1131_s6 + $0x18] sm:$0xff]  ;;  %885 = vset.pattern.permute.xlu2 %v1020_v32  ;;  %887 = vset.pattern.permute.xlu1 %v1020_v32  ;;  %s828_s19 = sshll.u32 %s1127_s29, 3  ;;  %s832_s20 = sshll.u32 %s1062_s16, 3 }
  0x2b   : > { %s1139_s5 = scalar_select %p217_p9, %s1062_s16, 1  ;;  %v1163_v19 = vld [vmem:[%s1131_s6 + $0x28] sm:$0xff]  ;;  %v1172_v27 = vld [vmem:[%s1131_s6 + $0x30] sm:$0xff]  ;;  %v1175_v29 = vld [vmem:[%s1131_s6 + $0x38] sm:$0xff]  ;;  %886 = vset.pattern.permute.xlu0 %v1020_v32  ;;  %v1187_v40 = vshrl.u32 %v291_v34, 7 }
  0x2c   : > { %s721_s26 = scalar_lea.hbm %s1367_s3, %s832_s20  ;;  %s216_s16 = scalar_lea.vmem [#allocation5], %s828_s19 }
  0x2d   : > { %s829_s7 = sshll.u32 %s1139_s5, 3  ;;  %s723_s28 = sshll.u32 %s216_s16, 4  ;;  %s724_s28 = int_to_ptr.vmem [resolvable:$true] %s723_s28 }
  0x2e   : > { %s220_s10 = scalar_lea.vmem %s1364_s0, %s829_s7  ;;  %s225_s17 = scalar_lea.vmem %s1366_s2, %s829_s7 }
  0x2f   : > { %v226_v0 = vld [vmem:[%s220_s10] sm:$0xff]  ;;  %s725_s30 = sshll.u32 %s721_s26, 4  ;;  %s711_s4 = scalar_lea.sflag [#allocation4], %s1127_s29  ;;  %s726_s30 = int_to_ptr.hbm [resolvable:$true] %s725_s30 }
  0x30   : > { %v251_v2 = vperm.slane %v226_v0, 0  ;;  %v231_v3 = vrot.slane %v226_v0, 4  ;;  %v229_v4 = vrot.slane %v226_v0, 2  ;;  %v228_v5 = vrot.slane %v226_v0, 1  ;;  %v1184_v33 = vld [vmem:[%s225_s17] sm:$0xff]  ;;  %s964_s6 = sshra.s32 %s726_s30, 4  ;;  %s965_s6 = int_to_ptr.hbm [resolvable:$true] %s964_s6 }
  0x31   : > { %v232_v8 = vrot.slane %v226_v0, 5  ;;  %v230_v12 = vrot.slane %v226_v0, 3  ;;  %v233_v22 = vrot.slane %v226_v0, 6  ;;  %v234_v25 = vrot.slane %v226_v0, 7  ;;  %s966_s5 = scalar_lea.hbm %s965_s6, 8  ;;  %s970_s9 = scalar_lea.hbm %s1367_s3, 16 }
  0x32   : > { %v267_v9 = vmul.f32 %v251_v2, %v1148_v1  ;;  %v255_v10 = vperm.slane %v231_v3, 0  ;;  %v253_v11 = vperm.slane %v229_v4, 0  ;;  %v252_v15 = vperm.slane %v228_v5, 0  ;;  %p967_p6 = scmp.ne.s32.totalorder %s965_s6, %s966_s5  ;;  %p971_p1 = scmp.lt.s32.totalorder %s965_s6, %s1367_s3 }
  0x33   : > { %v256_v17 = vperm.slane %v232_v8, 0  ;;  %v254_v18 = vperm.slane %v230_v12, 0  ;;  %v257_v26 = vperm.slane %v233_v22, 0  ;;  %v258_v28 = vperm.slane %v234_v25, 0  ;;  %p972_p3 = scmp.lt.s32.totalorder %s970_s9, %s966_s5 }
  0x34   : > { %275 = vadd.xlane.f32.xlu0 %v267_v9  ;;  %v271_v13 = vmul.f32 %v255_v10, %v1151_v6  ;;  %v269_v14 = vmul.f32 %v253_v11, %v1154_v7  ;;  %v268_v21 = vmul.f32 %v252_v15, %v1160_v16  ;;  %v239_v37 = vrot.slane %v1184_v33, 4  ;;  %p968_p13 = pnand %p967_p6, %p1091_p11 }
  0x35   : > { %v272_v23 = vmul.f32 %v256_v17, %v1163_v19  ;;  %v270_v24 = vmul.f32 %v254_v18, %v1166_v20  ;;  %v273_v30 = vmul.f32 %v257_v26, %v1172_v27  ;;  %v274_v31 = vmul.f32 %v258_v28, %v1175_v29  ;;  %p973_p4 = por %p972_p3, %p971_p1 }
  0x36   : > { %283 = vadd.xlane.f32.xlu2 %v271_v13  ;;  %279 = vadd.xlane.f32.xlu1 %v269_v14  ;;  %v237_v41 = vrot.slane %v1184_v33, 2  ;;  %v293_v44 = vperm.slane %v1184_v33, 0  ;;  %v297_v45 = vperm.slane %v239_v37, 0  ;;  %v236_v47 = vrot.slane %v1184_v33, 1  ;;  %p969_p0 = pneg %p968_p13 }
  0x37   : > { %v240_v48 = vrot.slane %v1184_v33, 5  ;;  %v238_v50 = vrot.slane %v1184_v33, 3  ;;  %v241_v3 = vrot.slane %v1184_v33, 6  ;;  %v242_v8 = vrot.slane %v1184_v33, 7 }
  0x38   : > { %v295_v46 = vperm.slane %v237_v41, 0  ;;  %vm301_vm0 = vcmp.lt.s32.totalorder %v1187_v40, %v293_v44  ;;  %vm305_vm2 = vcmp.lt.s32.totalorder %v1187_v40, %v297_v45  ;;  %v294_v56 = vperm.slane %v236_v47, 0  ;;  %p974_p7 = pnand %p973_p4, %p969_p0 }
  0x39   : > { %v298_v57 = vperm.slane %v240_v48, 0  ;;  %v296_v0 = vperm.slane %v238_v50, 0  ;;  %v299_v22 = vperm.slane %v241_v3, 0  ;;  %v300_v28 = vperm.slane %v242_v8, 0 }
  0x3a   : > { %vm303_vm3 = vcmp.lt.s32.totalorder %v1187_v40, %v295_v46  ;;  %vm302_vm4 = vcmp.lt.s32.totalorder %v1187_v40, %v294_v56 }
  0x3b   : > { %vm306_vm5 = vcmp.lt.s32.totalorder %v1187_v40, %v298_v57  ;;  %vm304_vm6 = vcmp.lt.s32.totalorder %v1187_v40, %v296_v0  ;;  %vm307_vm7 = vcmp.lt.s32.totalorder %v1187_v40, %v299_v22  ;;  %vm308_vm8 = vcmp.lt.s32.totalorder %v1187_v40, %v300_v28 }
  0x3c   : > { %277 = vadd.xlane.f32.xlu0 %v268_v21 }
  0x3e   : > { %285 = vadd.xlane.f32.xlu2 %v272_v23  ;;  %281 = vadd.xlane.f32.xlu1 %v270_v24 }
  0x44   : > { %287 = vadd.xlane.f32.xlu0 %v273_v30 }
  0x46   : > { %289 = vadd.xlane.f32.xlu1 %v274_v31 }
  0xa7   : > { %v276_v35 = vpop.xlane.xlu0 %275 }
  0xa8   : > { %v309_v36 = vmul.f32 1.442695, %v276_v35 }
  0xa9   : > { %v284_v38 = vpop.xlane.xlu2 %283  ;;  %v280_v39 = vpop.xlane.xlu1 %279 }
  0xaa   : > { %888 = vpow2.f32 %v309_v36  ;;  %v317_v42 = vmul.f32 1.442695, %v284_v38  ;;  %v313_v43 = vmul.f32 1.442695, %v280_v39 }
  0xac   : > { %890 = vpow2.f32 %v317_v42 }
  0xad   : > { %892 = vpow2.f32 %v313_v43 }
  0xaf   : > { %v278_v49 = vpop.xlane.xlu0 %277 }
  0xb0   : > { %v889_v51 = vpop.eup %888  ;;  %v311_v52 = vmul.f32 1.442695, %v278_v49 }
  0xb1   : > { %v286_v53 = vpop.xlane.xlu2 %285  ;;  %v282_v54 = vpop.xlane.xlu1 %281  ;;  %v325_v55 = vsel %vm301_vm0, %v889_v51, 0.0 }
  0xb2   : > { %v891_v58 = vpop.eup %890  ;;  %894 = vpow2.f32 %v311_v52  ;;  %v319_v59 = vmul.f32 1.442695, %v286_v53  ;;  %v315_v60 = vmul.f32 1.442695, %v282_v54  ;;  %v334_v61 = vsel %vm333_vm1, %v325_v55, 0.0  ;;  %400 = vperm.xlu2 %885, %v325_v55  }
  0xb3   : > { %v893_v62 = vpop.eup %892  ;;  %v335_v63 = vrot.slane %v334_v61, 4  ;;  %v1200_v2 = vsel %vm305_vm2, %v891_v58, 0.0 }
  0xb4   : > { %896 = vpow2.f32 %v319_v59  ;;  %v327_v4 = vsel %vm303_vm3, %v893_v62, 0.0  ;;  %v362_v5 = vsel %vm333_vm1, %v1200_v2, 0.0 }
  0xb5   : > { %898 = vpow2.f32 %v315_v60  ;;  %v336_v9 = vadd.f32 %v335_v63, %v334_v61  ;;  %410 = vperm.xlu1 %887, %v327_v4   ;;  %v348_v10 = vsel %vm333_vm1, %v327_v4, 0.0  ;;  %v363_v11 = vrot.slane %v362_v5, 4 }
  0xb6   : > { %v349_v12 = vrot.slane %v348_v10, 4 }
  0xb7   : > { %v337_v13 = vrot.slane %v336_v9, 2  ;;  %v288_v14 = vpop.xlane.xlu0 %287  ;;  %v364_v15 = vadd.f32 %v363_v11, %v362_v5 }
  0xb8   : > { %v895_v17 = vpop.eup %894  ;;  %v350_v18 = vadd.f32 %v349_v12, %v348_v10  ;;  %v321_v21 = vmul.f32 1.442695, %v288_v14 }
  0xb9   : > { %v338_v23 = vadd.f32 %v337_v13, %v336_v9  ;;  %v290_v24 = vpop.xlane.xlu1 %289  ;;  %v326_v25 = vsel %vm302_vm4, %v895_v17, 0.0  ;;  %v365_v26 = vrot.slane %v364_v15, 2 }
  0xba   : > { %v897_v30 = vpop.eup %896  ;;  %v351_v31 = vrot.slane %v350_v18, 2  ;;  %900 = vpow2.f32 %v321_v21  ;;  %v323_v32 = vmul.f32 1.442695, %v290_v24  ;;  %405 = vperm.xlu0 %886, %v326_v25   ;;  %v341_v33 = vsel %vm333_vm1, %v326_v25, 0.0 }
  0xbb   : > { %v899_v34 = vpop.eup %898  ;;  %v339_v35 = vrot.slane %v338_v23, 1  ;;  %v342_v36 = vrot.slane %v341_v33, 4  ;;  %v330_v37 = vsel %vm306_vm5, %v897_v30, 0.0  ;;  %v366_v38 = vadd.f32 %v365_v26, %v364_v15 }
  0xbc   : > { %v352_v39 = vadd.f32 %v351_v31, %v350_v18  ;;  %902 = vpow2.f32 %v323_v32  ;;  %v369_v41 = vsel %vm333_vm1, %v330_v37, 0.0  ;;  %v328_v42 = vsel %vm304_vm6, %v899_v34, 0.0 }
  0xbd   : > { %v340_v43 = vadd.f32 %v339_v35, %v338_v23  ;;  %v343_v44 = vadd.f32 %v342_v36, %v341_v33  ;;  %v370_v45 = vrot.slane %v369_v41, 4  ;;  %425 = vperm.xlu1 %887, %v330_v37   ;;  %415 = vperm.xlu2 %885, %v328_v42   ;;  %v355_v46 = vsel %vm333_vm1, %v328_v42, 0.0 }
  0xbe   : > { %v353_v47 = vrot.slane %v352_v39, 1  ;;  %v356_v48 = vrot.slane %v355_v46, 4  ;;  %v367_v49 = vrot.slane %v366_v38, 1 }
  0xbf   : > { %v502_v50 = vmax.f32 %v340_v43, 1e-30  ;;  %v344_v51 = vrot.slane %v343_v44, 2  ;;  %v371_v52 = vadd.f32 %v370_v45, %v369_v41 }
  0xc0   : > { %v901_v53 = vpop.eup %900  ;;  %v354_v54 = vadd.f32 %v353_v47, %v352_v39  ;;  %v357_v55 = vadd.f32 %v356_v48, %v355_v46  ;;  %v368_v56 = vadd.f32 %v367_v49, %v366_v38 }
  0xc1   : > { %v1219_v57 = vmul.f32 8.0, %v502_v50  ;;  %v345_v58 = vadd.f32 %v344_v51, %v343_v44  ;;  %v372_v59 = vrot.slane %v371_v52, 2  ;;  %v331_v60 = vsel %vm307_vm7, %v901_v53, 0.0 }
  0xc2   : > { %v903_v61 = vpop.eup %902  ;;  %v504_v62 = vmax.f32 %v354_v54, 1e-30  ;;  %v358_v63 = vrot.slane %v357_v55, 2  ;;  %v506_v0 = vmax.f32 %v368_v56, 1e-30  ;;  %v376_v3 = vsel %vm333_vm1, %v331_v60, 0.0 }
  0xc3   : > { %904 = vrcp.f32 %v1219_v57  ;;  %v346_v4 = vrot.slane %v345_v58, 1  ;;  %v373_v5 = vadd.f32 %v372_v59, %v371_v52  ;;  %v332_v8 = vsel %vm308_vm8, %v903_v61, 0.0 }
  0xc4   : > { %v1223_v9 = vmul.f32 8.0, %v504_v62  ;;  %v359_v10 = vadd.f32 %v358_v63, %v357_v55  ;;  %v383_v40 = vsel %vm333_vm1, %v332_v8, 0.0  ;;  %v377_v14 = vrot.slane %v376_v3, 4 }
  0xc5   : > { %v347_v11 = vadd.f32 %v346_v4, %v345_v58  ;;  %v374_v12 = vrot.slane %v373_v5, 1  ;;  %420 = vperm.xlu2 %885, %v1200_v2   ;;  %435 = vperm.xlu1 %887, %v332_v8   ;;  %v384_v13 = vrot.slane %v383_v40, 4  ;;  %v1228_v17 = vmul.f32 8.0, %v506_v0 }
  0xc6   : > { %906 = vrcp.f32 %v1223_v9  ;;  %v360_v15 = vrot.slane %v359_v10, 1  ;;  %v378_v24 = vadd.f32 %v377_v14, %v376_v3  ;;  %v527_v25 = vand.u32 2147483647, %v1219_v57 }
  0xc7   : > { %v503_v18 = vmax.f32 %v347_v11, 1e-30  ;;  %v375_v21 = vadd.f32 %v374_v12, %v373_v5  ;;  %v385_v22 = vadd.f32 %v384_v13, %v383_v40  ;;  %vm523_vm9 = vweird.f32 %v1219_v57 }
  0xc8   : > { %v361_v23 = vadd.f32 %v360_v15, %v359_v10  ;;  %908 = vrcp.f32 %v1228_v17  ;;  %v379_v32 = vrot.slane %v378_v24, 2  ;;  %v529_v36 = vand.u32 2147483648, %v1219_v57 }
  0xc9   : > { %v905_v26 = vpop.eup %904  ;;  %v1231_v28 = vmul.f32 8.0, %v503_v18  ;;  %v507_v30 = vmax.f32 %v375_v21, 1e-30  ;;  %v386_v2 = vrot.slane %v385_v22, 2  ;;  %vm1242_vm10 = vcmp.eq.f32.partialorder %v527_v25, 8.507059e+37 }
  0xca   : > { %v505_v31 = vmax.f32 %v361_v23, 1e-30  ;;  %v519_v33 = vmul.f32 %v905_v26, %v1219_v57  ;;  %v380_v39 = vadd.f32 %v379_v32, %v378_v24  ;;  %v557_v45 = vand.u32 2147483647, %v1223_v9 }
  0xcb   : > { %910 = vrcp.f32 %v1231_v28  ;;  %v1237_v34 = vmul.f32 8.0, %v507_v30  ;;  %v387_v35 = vadd.f32 %v386_v2, %v385_v22  ;;  %vm524_vm11 = vweird.f32 %v905_v26 }
  0xcc   : > { %v907_v37 = vpop.eup %906  ;;  %v1240_v38 = vmul.f32 8.0, %v505_v31  ;;  %v520_v41 = vsub.f32 1.0, %v519_v33  ;;  %v381_v46 = vrot.slane %v380_v39, 1  ;;  %v530_v49 = vor.u32 1.1754944e-38, %v529_v36  ;;  %vm525_vm14 = vmor %vm523_vm9, %vm524_vm11 }
  0xcd   : > { %912 = vrcp.f32 %v1237_v34  ;;  %v388_v43 = vrot.slane %v387_v35, 1  ;;  %430 = vperm.xlu2 %885, %v331_v60   ;;  %v549_v44 = vmul.f32 %v907_v37, %v1223_v9  ;;  %vm553_vm12 = vweird.f32 %v1223_v9 }
  0xce   : > { %914 = vrcp.f32 %v1240_v38  ;;  %v521_v47 = vmul.f32 %v905_v26, %v520_v41  ;;  %v1251_v51 = vpop.eup %908  ;;  %v382_v52 = vadd.f32 %v381_v46, %v380_v39  ;;  %vm554_vm13 = vweird.f32 %v907_v37 }
  0xcf   : > { %v389_v48 = vadd.f32 %v388_v43, %v387_v35  ;;  %v550_v50 = vsub.f32 1.0, %v549_v44  ;;  %v559_v54 = vand.u32 2147483648, %v1223_v9  ;;  %vm1256_vm15 = vcmp.eq.f32.partialorder %v557_v45, 8.507059e+37  ;;  %vm555_vm1 = vmor %vm553_vm12, %vm554_vm13 }
  0xd0   : > { %v522_v53 = vadd.f32 %v905_v26, %v521_v47  ;;  %vm538_vm0 = vweird.f32 %v1231_v28  ;;  %v508_v60 = vmax.f32 %v382_v52, 1e-30  ;;  %v542_v63 = vand.u32 2147483647, %v1231_v28 }
  0xd1   : > { %v911_v55 = vpop.eup %910  ;;  %v509_v56 = vmax.f32 %v389_v48, 1e-30  ;;  %v551_v58 = vmul.f32 %v907_v37, %v550_v50  ;;  %v544_v5 = vand.u32 2147483648, %v1231_v28  ;;  %v560_v40 = vor.u32 1.1754944e-38, %v559_v54 }
  0xd2   : > { %v526_v61 = vsel %vm525_vm14, %v905_v26, %v522_v53  ;;  %v534_v62 = vmul.f32 %v911_v55, %v1231_v28  ;;  %v1268_v10 = vmul.f32 8.0, %v508_v60  ;;  %vm539_vm2 = vweird.f32 %v911_v55 }
  0xd3   : > { %v913_v0 = vpop.eup %912  ;;  %v1263_v3 = vmul.f32 8.0, %v509_v56  ;;  %v531_v57 = vsel %vm1242_vm10, %v530_v49, %v526_v61  ;;  %v552_v4 = vadd.f32 %v907_v37, %v551_v58  ;;  %vm598_vm3 = vweird.f32 %v1237_v34  ;;  %vm540_vm6 = vmor %vm538_vm0, %vm539_vm2 }
  0xd4   : > { %v915_v8 = vpop.eup %914  ;;  %640 = vperm.xlu0 %886, %v531_v57   ;;  %v535_v11 = vsub.f32 1.0, %v534_v62  ;;  %v594_v12 = vmul.f32 %v913_v0, %v1237_v34  ;;  %v602_v14 = vand.u32 2147483647, %v1237_v34  ;;  %916 = vrcp.f32 %v1268_v10 }
  0xd5   : > { %v556_v13 = vsel %vm555_vm1, %v907_v37, %v552_v4  ;;  %918 = vrcp.f32 %v1263_v3  ;;  %vm1280_vm4 = vcmp.eq.f32.partialorder %v542_v63, 8.507059e+37  ;;  %v604_v22 = vand.u32 2147483648, %v1237_v34 }
  0xd6   : > { %v561_v15 = vsel %vm1256_vm15, %v560_v40, %v556_v13  ;;  %v536_v18 = vmul.f32 %v911_v55, %v535_v11  ;;  %v595_v21 = vsub.f32 1.0, %v594_v12  ;;  %v564_v23 = vmul.f32 %v915_v8, %v1240_v38 }
  0xd7   : > { %650 = vperm.xlu1 %887, %v561_v15   ;;  %v545_v25 = vor.u32 1.1754944e-38, %v544_v5  ;;  %vm599_vm5 = vweird.f32 %v913_v0  ;;  %vm1289_vm7 = vcmp.eq.f32.partialorder %v602_v14, 8.507059e+37  ;;  %vm569_vm8 = vweird.f32 %v915_v8 }
  0xd8   : > { %v537_v24 = vadd.f32 %v911_v55, %v536_v18  ;;  %v596_v26 = vmul.f32 %v913_v0, %v595_v21  ;;  %v565_v2 = vsub.f32 1.0, %v564_v23  ;;  %v579_v31 = vmul.f32 %v1251_v51, %v1228_v17  ;;  %vm600_vm9 = vmor %vm598_vm3, %vm599_vm5 }
  0xd9   : > { %v572_v35 = vand.u32 2147483647, %v1240_v38  ;;  %v574_v36 = vand.u32 2147483648, %v1240_v38  ;;  %v605_v28 = vor.u32 1.1754944e-38, %v604_v22  ;;  %vm568_vm10 = vweird.f32 %v1240_v38 }
  0xda   : > { %v541_v32 = vsel %vm540_vm6, %v911_v55, %v537_v24  ;;  %v597_v33 = vadd.f32 %v913_v0, %v596_v26  ;;  %v566_v39 = vmul.f32 %v915_v8, %v565_v2  ;;  %v580_v41 = vsub.f32 1.0, %v579_v31  ;;  %v917_v42 = vpop.eup %916  ;;  %vm570_vm12 = vmor %vm568_vm10, %vm569_vm8 }
  0xdb   : > { %v546_v37 = vsel %vm1280_vm4, %v545_v25, %v541_v32  ;;  %vm584_vm11 = vweird.f32 %v1251_v51  ;;  %v589_v44 = vand.u32 2147483648, %v1228_v17  ;;  %v919_v45 = vpop.eup %918  ;;  %v609_v48 = vmul.f32 %v917_v42, %v1268_v10 }
  0xdc   : > { %645 = vperm.xlu2 %885, %v546_v37   ;;  %v601_v43 = vsel %vm600_vm9, %v913_v0, %v597_v33  ;;  %v567_v47 = vadd.f32 %v915_v8, %v566_v39  ;;  %v581_v34 = vmul.f32 %v1251_v51, %v580_v41  ;;  %vm573_vm13 = vcmp.eq.f32.partialorder %v572_v35, 8.507059e+37 }
  0xdd   : > { %v606_v46 = vsel %vm1289_vm7, %v605_v28, %v601_v43  ;;  %v575_v49 = vor.u32 1.1754944e-38, %v574_v36  ;;  %v587_v50 = vand.u32 2147483647, %v1228_v17  ;;  %vm583_vm14 = vweird.f32 %v1228_v17 }
  0xde   : > { %v571_v38 = vsel %vm570_vm12, %v915_v8, %v567_v47  ;;  %v582_v52 = vadd.f32 %v1251_v51, %v581_v34  ;;  %v610_v53 = vsub.f32 1.0, %v609_v48  ;;  %vm585_vm15 = vmor %vm583_vm14, %vm584_vm11  ;;  %v624_v55 = vmul.f32 %v919_v45, %v1263_v3 }
  0xdf   : > { %665 = vperm.xlu1 %887, %v606_v46   ;;  %v576_v54 = vsel %vm573_vm13, %v575_v49, %v571_v38  ;;  %v590_v58 = vor.u32 1.1754944e-38, %v589_v44  ;;  %vm614_vm0 = vweird.f32 %v917_v42  ;;  %vm588_vm1 = vcmp.eq.f32.partialorder %v587_v50, 8.507059e+37 }
  0xe0   : > { %655 = vperm.xlu0 %886, %v576_v54   ;;  %v586_v56 = vsel %vm585_vm15, %v1251_v51, %v582_v52  ;;  %v611_v59 = vmul.f32 %v917_v42, %v610_v53  ;;  %vm613_vm2 = vweird.f32 %v1268_v10  ;;  %v619_v60 = vand.u32 2147483648, %v1268_v10 }
  0xe1   : > { %v625_v61 = vsub.f32 1.0, %v624_v55  ;;  %v591_v17 = vsel %vm588_vm1, %v590_v58, %v586_v56  ;;  %v617_v63 = vand.u32 2147483647, %v1268_v10  ;;  %v634_v0 = vand.u32 2147483648, %v1263_v3  ;;  %vm615_vm3 = vmor %vm613_vm2, %vm614_vm0 }
  0xe2   : > { %v612_v62 = vadd.f32 %v917_v42, %v611_v59  ;;  %vm628_vm4 = vweird.f32 %v1263_v3  ;;  %vm629_vm5 = vweird.f32 %v919_v45  ;;  %v620_v4 = vor.u32 1.1754944e-38, %v619_v60 }
  0xe3   : > { %v626_v57 = vmul.f32 %v919_v45, %v625_v61  ;;  %v632_v8 = vand.u32 2147483647, %v1263_v3  ;;  %vm618_vm6 = vcmp.eq.f32.partialorder %v617_v63, 8.507059e+37  ;;  %vm630_vm7 = vmor %vm628_vm4, %vm629_vm5  ;;  %v635_v40 = vor.u32 1.1754944e-38, %v634_v0 }
  0xe4   : > { %660 = vperm.xlu2 %885, %v591_v17   ;;  %v616_v51 = vsel %vm615_vm3, %v917_v42, %v612_v62  ;;  %vm694_vm9 = vcmask 1041409   ;;  %vm696_vm10 = vcmask 1042434   ;;  %vm698_vm11 = vcmask 1043459  }
  0xe5   : > { %v627_v5 = vadd.f32 %v919_v45, %v626_v57  ;;  %v621_v11 = vsel %vm618_vm6, %v620_v4, %v616_v51  ;;  %vm633_vm8 = vcmp.eq.f32.partialorder %v632_v8, 8.507059e+37  ;;  %vm700_vm12 = vcmask 1044484  }
  0xe6   : > { %vm702_vm13 = vcmask 1045509   ;;  %vm704_vm14 = vcmask 1046534   ;;  %vm706_vm15 = vcmask 1047559  }
  0xe7   : > { %v631_v12 = vsel %vm630_vm7, %v919_v45, %v627_v5 }
  0xe8   : > { %670 = vperm.xlu0 %886, %v621_v11   ;;  %v636_v10 = vsel %vm633_vm8, %v635_v40, %v631_v12 }
  0xec   : > { %675 = vperm.xlu2 %885, %v636_v10  }
 0x10c   : > { %v401_v13 = vpop.permute.xlu2 %400 }
 0x10d   : > { %v438_v9 = vmul.f32 %v401_v13, %v1148_v1 }
 0x10f   : > { %v446_v24 = vrot.slane %v438_v9, 4 }
 0x111   : > { %v447_v2 = vadd.f32 %v446_v24, %v438_v9 }
 0x113   : > { %v448_v28 = vrot.slane %v447_v2, 2 }
 0x115   : > { %v449_v45 = vadd.f32 %v448_v28, %v447_v2 }
 0x117   : > { %v416_v14 = vpop.permute.xlu2 %415  ;;  %v450_v52 = vrot.slane %v449_v45, 1 }
 0x118   : > { %v441_v26 = vmul.f32 %v416_v14, %v1166_v20 }
 0x119   : > { %v451_v59 = vadd.f32 %v450_v52, %v449_v45 }
 0x11a   : > { %v464_v32 = vrot.slane %v441_v26, 4 }
 0x11c   : > { %v465_v39 = vadd.f32 %v464_v32, %v441_v26 }
 0x11e   : > { %v466_v46 = vrot.slane %v465_v39, 2 }
 0x11f   : > { %v421_v21 = vpop.permute.xlu2 %420 }
 0x120   : > { %v442_v33 = vmul.f32 %v421_v21, %v1151_v6  ;;  %v467_v54 = vadd.f32 %v466_v46, %v465_v39 }
 0x122   : > { %v470_v41 = vrot.slane %v442_v33, 4  ;;  %v468_v62 = vrot.slane %v467_v54, 1 }
 0x124   : > { %v471_v47 = vadd.f32 %v470_v41, %v442_v33  ;;  %v469_v11 = vadd.f32 %v468_v62, %v467_v54 }
 0x127   : > { %v411_v15 = vpop.permute.xlu1 %410  ;;  %v431_v35 = vpop.permute.xlu2 %430 }
 0x128   : > { %v440_v3 = vmul.f32 %v411_v15, %v1154_v7  ;;  %v444_v7 = vmul.f32 %v431_v35, %v1172_v27 }
 0x12a   : > { %v458_v30 = vrot.slane %v440_v3, 4  ;;  %v482_v6 = vrot.slane %v444_v7, 4 }
 0x12c   : > { %v406_v18 = vpop.permute.xlu0 %405  ;;  %v459_v36 = vadd.f32 %v458_v30, %v440_v3  ;;  %v483_v53 = vadd.f32 %v482_v6, %v444_v7 }
 0x12d   : > { %v439_v22 = vmul.f32 %v406_v18, %v1160_v16 }
 0x12e   : > { %v460_v20 = vrot.slane %v459_v36, 2  ;;  %v484_v60 = vrot.slane %v483_v53, 2 }
 0x12f   : > { %v426_v23 = vpop.permute.xlu1 %425  ;;  %v452_v25 = vrot.slane %v439_v22, 4 }
 0x130   : > { %v443_v16 = vmul.f32 %v426_v23, %v1163_v19  ;;  %v461_v49 = vadd.f32 %v460_v20, %v459_v36  ;;  %v472_v19 = vrot.slane %v471_v47, 2  ;;  %v485_v12 = vadd.f32 %v484_v60, %v483_v53 }
 0x131   : > { %v453_v31 = vadd.f32 %v452_v25, %v439_v22 }
 0x132   : > { %v476_v43 = vrot.slane %v443_v16, 4  ;;  %v462_v56 = vrot.slane %v461_v49, 1  ;;  %v473_v61 = vadd.f32 %v472_v19, %v471_v47  ;;  %v486_v22 = vrot.slane %v485_v12, 1 }
 0x133   : > { %v454_v1 = vrot.slane %v453_v31, 2 }
 0x134   : > { %v477_v50 = vadd.f32 %v476_v43, %v443_v16  ;;  %v463_v51 = vadd.f32 %v462_v56, %v461_v49  ;;  %v474_v8 = vrot.slane %v473_v61, 1 }
 0x135   : > { %v455_v44 = vadd.f32 %v454_v1, %v453_v31  ;;  %v487_v31 = vadd.f32 %v486_v22, %v485_v12 }
 0x136   : > { %v646_v34 = vpop.permute.xlu2 %645  ;;  %v475_v21 = vadd.f32 %v474_v8, %v473_v61 }
 0x137   : > { %v436_v37 = vpop.permute.xlu1 %435  ;;  %v456_v38 = vrot.slane %v455_v44, 1 }
 0x138   : > { %v445_v42 = vmul.f32 %v436_v37, %v1175_v29  ;;  %v478_v29 = vrot.slane %v477_v50, 2 }
 0x139   : > { %v457_v58 = vadd.f32 %v456_v38, %v455_v44 }
 0x13a   : > { %v488_v48 = vrot.slane %v445_v42, 4  ;;  %v479_v5 = vadd.f32 %v478_v29, %v477_v50 }
 0x13b   : > { %v679_v4 = vmul.f32 %v646_v34, %v457_v58 }
 0x13c   : > { %v489_v55 = vadd.f32 %v488_v48, %v445_v42  ;;  %v480_v18 = vrot.slane %v479_v5, 1 }
 0x13e   : > { %v490_v63 = vrot.slane %v489_v55, 2  ;;  %v661_v57 = vpop.permute.xlu2 %660  ;;  %v481_v26 = vadd.f32 %v480_v18, %v479_v5 }
 0x13f   : > { %v682_v24 = vmul.f32 %v661_v57, %v475_v21 }
 0x140   : > { %v491_v10 = vadd.f32 %v490_v63, %v489_v55 }
 0x142   : > { %v492_v23 = vrot.slane %v491_v10, 1 }
 0x144   : > { %v493_v32 = vadd.f32 %v492_v23, %v491_v10 }
 0x146   : > { %v641_v27 = vpop.permute.xlu0 %640  ;;  %v676_v30 = vpop.permute.xlu2 %675 }
 0x147   : > { %v678_v0 = vmul.f32 %v641_v27, %v451_v59  ;;  %v685_v37 = vmul.f32 %v676_v30, %v493_v32 }
 0x149   : > { %v651_v17 = vpop.permute.xlu1 %650  ;;  %v695_v13 = vsel %vm694_vm9, %v679_v4, %v678_v0 }
 0x14a   : > { %v680_v40 = vmul.f32 %v651_v17, %v463_v51 }
 0x14c   : > { %v697_v9 = vsel %vm696_vm10, %v680_v40, %v695_v13 }
 0x151   : > { %v666_v25 = vpop.permute.xlu1 %665 }
 0x152   : > { %v656_v14 = vpop.permute.xlu0 %655  ;;  %v683_v33 = vmul.f32 %v666_v25, %v481_v26 }
 0x153   : > { %v681_v15 = vmul.f32 %v656_v14, %v469_v11 }
 0x155   : > { %v699_v3 = vsel %vm698_vm11, %v681_v15, %v697_v9 }
 0x156   : > { %v701_v2 = vsel %vm700_vm12, %v682_v24, %v699_v3 }
 0x157   : > { %v703_v28 = vsel %vm702_vm13, %v683_v33, %v701_v2 }
 0x15a   : > { %v671_v35 = vpop.permute.xlu0 %670 }
 0x15b   : > { %v684_v36 = vmul.f32 %v671_v35, %v487_v31 }
 0x15d   : > { %v705_v1 = vsel %vm704_vm14, %v684_v36, %v703_v28 }
 0x15e   : > { %v707_v16 = vsel %vm706_vm15, %v685_v37, %v705_v1 }
 0x15f   : > { %709 = vst [vmem:[%s216_s16] sm:$0xff] %v707_v16 }
 0x160   : > { %977 = shalt.err (!%p974_p7)
}
 0x161   : > { %838 = dma.vmem_to_hbm [thread:$0]  (%p1091_p11), %s724_s28, 128, %s726_s30, %s711_s4  }
 0x162 PF: > { %s737_s29 = sand.u32 1, %s1004_s12   ;;  %p1381_p5 = scmp.ge.s32.totalorder %s1016_s15, 2 }
 0x163   : > { %s738_s11 = scalar_lea.sflag [#allocation4], %s737_s29 }
 0x164   : > { %p845_p8 = pnand %p1381_p5, %p1095_p12 }
 0x166   : > { %p846_p10 = pneg %p845_p8 }
 0x168   : > { %999 = dma.done.wait (%p846_p10), %s738_s11, 128  }
 0x169   : > { %1001 = vsyncadd (%p846_p10), %s738_s11, 4294967168  ;;  %p16_p2 = scmp.ge.s32.totalorder %s1066_s18, 4   ;;  %s1382_s12 = smov %s1008_s13 }
 0x16a   : > { %s1383_s13 = smov %s1012_s14  ;;  %s1384_s14 = smov %s1078_s21 }
 0x16b   : > { %s1385_s15 = smov %s1066_s18  ;;  %18 = sbr.rel (!%p16_p2) target bundleno = 5 (0x5), region = 83 }
 0x170   :  { %744 = vsyncpa [#allocation3], 1 }
 0x171   :  { %746 = vsyncpa [#allocation3 + $0x1], 1 }
 0x172   :  { %747 = vsyncpa [#allocation4], 1 }
 0x173   :  { %749 = vsyncpa [#allocation4 + $0x1], 1 }

</bundles_post_ra>
